<compile_context>
chip_gen: v7x
topology: tpu7x:2x2x1
jax: 0.10.0
libtpu: 0.0.40
codegen_flags: <defaults>
</compile_context>

<pallas_src>
import functools

import jax
import jax.numpy as jnp
from jax.experimental import pallas as pl
from jax.experimental.pallas import tpu as pltpu


def _gated_attention_kernel(x_ref, wab_ref, bab_ref, wc_ref, bc_ref, out_ref,
                            *, h_dim, reduce_head):
    """One grid step processes a (tm, dim) tile of rows of x."""
    x = x_ref[...]                                            # (tm, dim)
    # Fused attention_a / attention_b projection: one wide MXU matmul,
    # f32 accumulation regardless of input dtype.
    ab = (jnp.dot(x, wab_ref[...], preferred_element_type=jnp.float32)
          + bab_ref[...])                                     # (tm, 2*h_dim)
    a = jnp.tanh(ab[:, :h_dim])                               # attention_a
    b = jax.nn.sigmoid(ab[:, h_dim:])                         # attention_b
    gated = a * b                                             # (tm, h_dim) f32
    if reduce_head:
        # n_classes == 1: VPU multiply + XLU lane-reduce instead of an MXU
        # matmul with a 1-wide output (avoids an MXU push/pop per tile).
        out_ref[...] = (jnp.sum(gated * wc_ref[...], axis=-1, keepdims=True)
                        + bc_ref[...])                        # (tm, 1)
    else:
        out_ref[...] = (jnp.dot(gated, wc_ref[...],
                                preferred_element_type=jnp.float32)
                        + bc_ref[...])                        # (tm, n_classes)


def _round_up(n, m):
    return ((n + m - 1) // m) * m


def _pick_tm(dim, h_dim, n_classes, in_bytes, vmem_budget=32 * 1024 * 1024):
    """Largest row tile whose (conservative) working set fits the VMEM budget."""
    best = 8
    for tm in (8, 16, 32, 64, 128, 256, 512, 1024):
        x_tile = 2 * tm * dim * in_bytes               # double-buffered x tile
        w_res = 2 * dim * 2 * h_dim * in_bytes         # fused Wa|Wb (x2, conservative)
        wc_res = 2 * h_dim * max(n_classes, 1) * 4
        interm = 4 * tm * 2 * h_dim * 4                # ab / a / b / gated (f32)
        out_tile = 2 * tm * max(n_classes, 128) * 4    # lane-padded estimate
        if x_tile + w_res + wc_res + interm + out_tile <= vmem_budget:
            best = tm
    return best


def gated_attention(x, wa, ba, wb, bb, wc, bc, *, tm=None, matmul_dtype=None):
    """Pallas forward.  Returns (A, x) matching the PyTorch module."""
    x = jnp.asarray(x)
    N, dim = x.shape
    h_dim = wa.shape[1]
    n_classes = wc.shape[1]

    # Biases may come in as (out,) or (1, out).
    ba = jnp.asarray(ba).reshape(1, h_dim)
    bb = jnp.asarray(bb).reshape(1, h_dim)
    bc = jnp.asarray(bc).reshape(1, n_classes)

    # Fuse the two input projections into one wide weight / bias.
    wab = jnp.concatenate([wa, wb], axis=1)           # (dim, 2*h_dim)
    bab = jnp.concatenate([ba, bb], axis=1)           # (1, 2*h_dim)

    # Optional bf16 for the big matmul operands (f32 accumulation is kept
    # inside the kernel); halves HBM traffic on memory-bound v6e/v7x.
    if matmul_dtype is not None:
        x_in = x.astype(matmul_dtype)
        wab = wab.astype(matmul_dtype)
    else:
        x_in = x
    in_bytes = jnp.dtype(x_in.dtype).itemsize

    reduce_head = (n_classes == 1)
    wc_in = wc.T if reduce_head else wc               # (1, h_dim) or (h_dim, nc)

    # Row-tile selection: as large as the VMEM budget allows, clamped to the
    # data size, keeping >=2 grid steps for larger inputs (v7x megacore).
    if tm is None:
        tm = _pick_tm(dim, h_dim, n_classes, in_bytes)
    tm = min(tm, _round_up(N, 8))
    if N >= 256 and _round_up(N, tm) // tm < 2:
        tm = pl.cdiv(N, 2)
    tm = max(8, _round_up(tm, 8))

    num_tiles = pl.cdiv(N, tm)
    n_pad = num_tiles * tm
    if n_pad != N:
        x_in = jnp.pad(x_in, ((0, n_pad - N), (0, 0)))

    kernel = functools.partial(_gated_attention_kernel,
                               h_dim=h_dim, reduce_head=reduce_head)

    a_pad = pl.pallas_call(
        kernel,
        out_shape=jax.ShapeDtypeStruct((n_pad, n_classes), jnp.float32),
        grid_spec=pltpu.PrefetchScalarGridSpec(
            num_scalar_prefetch=0,
            grid=(num_tiles,),
            in_specs=[
                # x: tiled over rows, full feature dim.
                pl.BlockSpec((tm, dim), lambda i: (i, 0)),
                # Fused weights / biases: full arrays, same block every step.
                pl.BlockSpec((dim, 2 * h_dim), lambda i: (0, 0)),   # Wa|Wb
                pl.BlockSpec((1, 2 * h_dim), lambda i: (0, 0)),     # ba|bb
                pl.BlockSpec(wc_in.shape, lambda i: (0, 0)),        # Wc
                pl.BlockSpec((1, n_classes), lambda i: (0, 0)),     # bc
            ],
            out_specs=pl.BlockSpec((tm, n_classes), lambda i: (i, 0)),
        ),
        compiler_params=pltpu.CompilerParams(
            dimension_semantics=("parallel",),
            vmem_limit_bytes=40 * 1024 * 1024),
    )(x_in, wab, bab, wc_in, bc)

    A = a_pad[:N]
    # PyTorch forward returns (A, x): x is a pure pass-through (original dtype).
    return A, x


def _reference(x, wa, ba, wb, bb, wc, bc):
    a = jnp.tanh(x @ wa + ba)
    b = jax.nn.sigmoid(x @ wb + bb)
    return (a * b) @ wc + bc, x


if __name__ == "__main__":
    key = jax.random.PRNGKey(0)

    def make_params(k, dim, h_dim, n_classes):
        kwa, kba, kwb, kbb, kwc, kbc = jax.random.split(k, 6)
        ba_bound = 1.0 / (dim ** 0.5)
        bc_bound = 1.0 / (h_dim ** 0.5)
        wa = jax.random.uniform(kwa, (dim, h_dim), jnp.float32, -ba_bound, ba_bound)
        ba = jax.random.uniform(kba, (h_dim,), jnp.float32, -ba_bound, ba_bound)
        wb = jax.random.uniform(kwb, (dim, h_dim), jnp.float32, -ba_bound, ba_bound)
        bb = jax.random.uniform(kbb, (h_dim,), jnp.float32, -ba_bound, ba_bound)
        wc = jax.random.uniform(kwc, (h_dim, n_classes), jnp.float32, -bc_bound, bc_bound)
        bc = jax.random.uniform(kbc, (n_classes,), jnp.float32, -bc_bound, bc_bound)
        return wa, ba, wb, bb, wc, bc

    # Case 1: module-default head (n_classes=1), N NOT a tile multiple
    # (exercises the padding path and the VPU-reduction head).
    N, dim, h_dim, n_classes = 300, 128, 128, 1
    kx, kp, key = jax.random.split(key, 3)
    x = jax.random.normal(kx, (N, dim), dtype=jnp.float32)
    params = make_params(kp, dim, h_dim, n_classes)

    A, x_out = gated_attention(x, *params)
    A = jax.block_until_ready(A)
    x_out = jax.block_until_ready(x_out)
    A_ref, _ = _reference(x, *params)
    assert A.shape == (N, n_classes) and x_out.shape == (N, dim)
    assert jnp.allclose(A, A_ref, atol=1e-5, rtol=1e-5)
    assert jnp.array_equal(x_out, x)

    # Case 2: same head with bf16 matmul operands (f32 accumulation kept).
    A_bf16, _ = gated_attention(x, *params, matmul_dtype=jnp.bfloat16)
    A_bf16 = jax.block_until_ready(A_bf16)
    assert jnp.allclose(A_bf16, A_ref, atol=1e-1, rtol=1e-1)

    # Case 3: n_classes > 1 exercises the matmul head path.
    N2, nc2 = 64, 4
    kx2, kp2, key = jax.random.split(key, 3)
    x2 = jax.random.normal(kx2, (N2, dim), dtype=jnp.float32)
    params2 = make_params(kp2, dim, h_dim, nc2)
    A2, _ = gated_attention(x2, *params2)
    A2 = jax.block_until_ready(A2)
    A2_ref, _ = _reference(x2, *params2)
    assert A2.shape == (N2, nc2)
    assert jnp.allclose(A2, A2_ref, atol=1e-5, rtol=1e-5)

    print("KERNEL_OK")
</pallas_src>

<mosaic_0001>
module attributes {stable_mosaic.version = 11 : i64} {
  func.func @_gated_attention_kernel(%arg0: i32, %arg1: memref<152x128xf32, #tpu.memory_space<vmem>>, %arg2: memref<128x256xf32, #tpu.memory_space<vmem>>, %arg3: memref<1x256xf32, #tpu.memory_space<vmem>>, %arg4: memref<1x128xf32, #tpu.memory_space<vmem>>, %arg5: memref<1x1xf32, #tpu.memory_space<vmem>>, %arg6: memref<152x1xf32, #tpu.memory_space<vmem>>) attributes {dimension_semantics = [#tpu.dimension_semantics<parallel>], iteration_bounds = array<i64: 2>, scalar_prefetch = 0 : i64, scratch_operands = 0 : i64, tpu.core_type = #tpu.core_type<tc>, window_params = [{transform_indices = @transform_0, window_bounds = array<i64: 152, 128>}, {pipeline_mode = #tpu.pipeline_mode<synchronous>, transform_indices = @transform_1, window_bounds = array<i64: 128, 256>}, {pipeline_mode = #tpu.pipeline_mode<synchronous>, transform_indices = @transform_2, window_bounds = array<i64: 1, 256>}, {pipeline_mode = #tpu.pipeline_mode<synchronous>, transform_indices = @transform_3, window_bounds = array<i64: 1, 128>}, {pipeline_mode = #tpu.pipeline_mode<synchronous>, transform_indices = @transform_4, window_bounds = array<i64: 1, 1>}, {transform_indices = @transform_5, window_bounds = array<i64: 152, 1>}]} {
    %c0 = arith.constant 0 : index
    %c0_0 = arith.constant 0 : index
    %0 = vector.load %arg1[%c0, %c0_0] : memref<152x128xf32, #tpu.memory_space<vmem>>, vector<152x128xf32>
    %c0_1 = arith.constant 0 : index
    %c0_2 = arith.constant 0 : index
    %1 = vector.load %arg2[%c0_1, %c0_2] : memref<128x256xf32, #tpu.memory_space<vmem>>, vector<128x256xf32>
    %cst = arith.constant dense<0.000000e+00> : vector<152x256xf32>
    %2 = tpu.matmul %0, %1, %cst {dimension_numbers = #tpu.dot_dimension_numbers<[1], [0], [0], [1], [0, 0, 1, 1], [], []>} : vector<152x128xf32>, vector<128x256xf32>, vector<152x256xf32> -> vector<152x256xf32>
    %c0_3 = arith.constant 0 : index
    %c0_4 = arith.constant 0 : index
    %3 = vector.load %arg3[%c0_3, %c0_4] : memref<1x256xf32, #tpu.memory_space<vmem>>, vector<1x256xf32>
    %4 = vector.broadcast %3 : vector<1x256xf32> to vector<152x256xf32>
    %5 = arith.addf %2, %4 : vector<152x256xf32>
    %6 = vector.extract_strided_slice %5 {offsets = [0, 0], sizes = [152, 128], strides = [1, 1]} : vector<152x256xf32> to vector<152x128xf32>
    %7 = math.tanh %6 : vector<152x128xf32>
    %8 = vector.extract_strided_slice %5 {offsets = [0, 128], sizes = [152, 128], strides = [1, 1]} : vector<152x256xf32> to vector<152x128xf32>
    %9 = arith.negf %8 : vector<152x128xf32>
    %10 = math.exp %9 : vector<152x128xf32>
    %cst_5 = arith.constant 1.000000e+00 : f32
    %11 = vector.broadcast %cst_5 : f32 to vector<152x128xf32>
    %12 = arith.addf %11, %10 : vector<152x128xf32>
    %13 = arith.divf %11, %12 : vector<152x128xf32>
    %14 = arith.mulf %7, %13 : vector<152x128xf32>
    %c0_6 = arith.constant 0 : index
    %c0_7 = arith.constant 0 : index
    %15 = vector.load %arg4[%c0_6, %c0_7] : memref<1x128xf32, #tpu.memory_space<vmem>>, vector<1x128xf32>
    %16 = vector.broadcast %15 : vector<1x128xf32> to vector<152x128xf32>
    %17 = arith.mulf %14, %16 : vector<152x128xf32>
    %cst_8 = arith.constant dense<0.000000e+00> : vector<152xf32>
    %18 = vector.multi_reduction <add>, %17, %cst_8 [1] : vector<152x128xf32> to vector<152xf32>
    %19 = vector.shape_cast %18 : vector<152xf32> to vector<152x1xf32>
    %c0_9 = arith.constant 0 : index
    %c0_10 = arith.constant 0 : index
    %20 = vector.load %arg5[%c0_9, %c0_10] : memref<1x1xf32, #tpu.memory_space<vmem>>, vector<1x1xf32>
    %21 = vector.broadcast %20 : vector<1x1xf32> to vector<152x1xf32>
    %22 = arith.addf %19, %21 : vector<152x1xf32>
    %c0_11 = arith.constant 0 : index
    %c0_12 = arith.constant 0 : index
    %23 = vector.load %arg6[%c0_11, %c0_12] : memref<152x1xf32, #tpu.memory_space<vmem>>, vector<152x1xf32>
    tpu.vector_store %arg6[%c0_11, %c0_12], %22 {strides = array<i32>} : memref<152x1xf32, #tpu.memory_space<vmem>>, vector<152x1xf32>,
    return
  }
  func.func @transform_0(%arg0: i32) -> (i32, i32) {
    %c0_i32 = arith.constant 0 : i32
    %c0_i32_0 = arith.constant 0 : i32
    return %arg0, %c0_i32 : i32, i32
  }
  func.func @transform_1(%arg0: i32) -> (i32, i32) {
    %c0_i32 = arith.constant 0 : i32
    %c0_i32_0 = arith.constant 0 : i32
    %c0_i32_1 = arith.constant 0 : i32
    return %c0_i32, %c0_i32_0 : i32, i32
  }
  func.func @transform_2(%arg0: i32) -> (i32, i32) {
    %c0_i32 = arith.constant 0 : i32
    %c0_i32_0 = arith.constant 0 : i32
    %c0_i32_1 = arith.constant 0 : i32
    return %c0_i32, %c0_i32_0 : i32, i32
  }
  func.func @transform_3(%arg0: i32) -> (i32, i32) {
    %c0_i32 = arith.constant 0 : i32
    %c0_i32_0 = arith.constant 0 : i32
    %c0_i32_1 = arith.constant 0 : i32
    return %c0_i32, %c0_i32_0 : i32, i32
  }
  func.func @transform_4(%arg0: i32) -> (i32, i32) {
    %c0_i32 = arith.constant 0 : i32
    %c0_i32_0 = arith.constant 0 : i32
    %c0_i32_1 = arith.constant 0 : i32
    return %c0_i32, %c0_i32_0 : i32, i32
  }
  func.func @transform_5(%arg0: i32) -> (i32, i32) {
    %c0_i32 = arith.constant 0 : i32
    %c0_i32_0 = arith.constant 0 : i32
    return %arg0, %c0_i32 : i32, i32
  }
}

</mosaic_0001>

<bundles_post_ra>
// kernel: tpu_custom_call.1
= control target key start
LH: loop header
LB: loop body
LE: loop exit
PB: predicated region body
PF: predicated region fallthrough
CT: control target
= control target key end

     0   :  { %s1562_s0 = inlined_call_operand.hbm [shape: f32[304,128], index: 0, kind: input, shape index: {}]   ;;  %s1563_s1 = inlined_call_operand.hbm [shape: f32[128,256], index: 1, kind: input, shape index: {}]   ;;  %s1564_s2 = inlined_call_operand.vmem [shape: f32[1,256], index: 2, kind: input, shape index: {}]   ;;  %s1565_s3 = inlined_call_operand.vmem [shape: f32[1,128], index: 3, kind: input, shape index: {}]   ;;  %s1566_s4 = inlined_call_operand.<no memory space> [shape: f32[1,1], index: 4, kind: input, shape index: {}]   ;;  %s1567_s5 = inlined_call_operand.vmem [shape: f32[304,1], index: 5, kind: output, shape index: {}]  }
   0x1   :  { %v10_v0 = vstv %s1566_s4 }
   0x2   :  { %11 = vst [vmem:[#allocation2] sm:$0x1] %v10_v0 }
   0x3   :  { %12 = vsyncpa [#allocation4], 0 }
   0x4   :  { %14 = vsyncpa [#allocation4 + $0x1], 0 }
   0x5   :  { %15 = vsyncpa [#allocation6], 0  ;;  %s1235_s20 = smov 0   ;;  %s1237_s21 = smov 0  }
   0x6   :  { %s1239_s22 = smov 0   ;;  %s1241_s23 = smov 0  }
   0x7 LB: > { %s845_s4 = sadd.s32 4294967295, %s1193_s23   ;;  %p41_p0 = scmp.ne.s32.totalorder %s1185_s21, %s1181_s20  ;;  %s1193_s23 = sphi %s1241_s23, %s1584_s23   ;;  %s1189_s22 = sphi %s1239_s22, %s1583_s22   ;;  %s1185_s21 = sphi %s1237_s21, %s1582_s21   ;;  %s1181_s20 = sphi %s1235_s20, %s1581_s20  }
   0x8   : > { %p1257_p1 = scmp.eq.s32.totalorder %s845_s4, 0  ;;  %p847_p2 = scmp.ge.s32.totalorder %s1193_s23, 1 }
   0x9   : > { %p162_p3 = scmp.lt.s32.totalorder %s1193_s23, 3  ;;  %s1195_s27 = smov [#allocation5]  }
   0xa   : > { %s1572_s24 = scalar_select %p1257_p1, 1, 0 }
   0xb   : > { %p1265_p4 = por %p1257_p1, %p41_p0  ;;  %p1269_p5 = pnand %p847_p2, %p162_p3 }
   0xc   : > { %s174_s28 = sshll.u32 %s1195_s27, 4  ;;  %s1282_s30 = sadd.s32 1, %s1193_s23   ;;  %s175_s28 = int_to_ptr.vmem [resolvable:$true] %s174_s28 }
   0xd   : > { %s1573_s25 = scalar_select %p1265_p4, 1, 0 }
   0xe   : > { %s1574_s26 = scalar_select %p1269_p5, 1, 0 }
   0xf   : > { %p934_p6 = pneg %p1269_p5  ;;  %s28_s6 = sadd.s32 1, %s1189_s22 }
  0x10   : > { %s25_s7 = ssub.s32 %s1193_s23, %s1282_s30  ;;  %s1097_s10 = scalar_lea.hbm %s1563_s1, 4096 }
  0x11   : > { %p1277_p7 = pnand %p934_p6, %p1257_p1  ;;  %p1098_p8 = scmp.ne.s32.totalorder %s1563_s1, %s1097_s10 }
  0x12   : > { %p1104_p12 = scmp.lt.u32.totalorder %s1097_s10, %s1563_s1 }
  0x13   : > { %p1099_p9 = pneg %p1277_p7 }
  0x15   : > { %p1100_p10 = pnand %p1099_p9, %p1098_p8 }
  0x17   : > { %p1101_p11 = pneg %p1100_p10 }
  0x19   : > { %p1106_p13 = pnand %p1104_p12, %p1101_p11 }
  0x1b   : > { %1109 = shalt.err (!%p1106_p13)
}
  0x1c   : > { %s1110_s15 = scalar_lea.vmem %s175_s28, 4096  ;;  %p1118_p6 = scmp.lt.s32.totalorder %s175_s28, %s175_s28 }
  0x1d   : > { %p1111_p0 = scmp.ne.s32.totalorder %s175_s28, %s1110_s15  ;;  %p1119_p1 = scmp.lt.s32.totalorder %s1110_s15, %s1110_s15 }
  0x1f   : > { %p1113_p2 = pnand %p1111_p0, %p1099_p9  ;;  %p1120_p4 = por %p1119_p1, %p1118_p6 }
  0x21   : > { %p1114_p3 = pneg %p1113_p2 }
  0x23   : > { %p1121_p5 = pnand %p1120_p4, %p1114_p3 }
  0x25   : > { %1124 = shalt.err (!%p1121_p5)
}
  0x26   : > { %s1196_s16 = smov 256   ;;  %s1197_s17 = smov 16  }
  0x27   : > { %937 = dma.hbm_to_vmem [thread:$0]  (!%p1277_p7), %s1563_s1, 4096, %s175_s28, [#allocation6], %s1196_s16, %s1196_s16, %s1197_s17  }
  0x28   : > { %p26_p8 = scmp.eq.s32.totalorder %s25_s7, 0  ;;  %p35_p9 = scmp.ne.s32.totalorder %s1189_s22, %s1185_s21 }
  0x29   : > { %p36_p1 = scmp.eq.s32.totalorder %s1193_s23, 0  ;;  %p943_p4 = scmp.lt.s32.totalorder %s1193_s23, 2 }
  0x2a   : > { %s1308_s20 = scalar_select %p26_p8, %s1189_s22, %s28_s6  }
  0x2b   : > { %p37_p5 = por %p36_p1, %p35_p9  ;;  %s197_s27 = sand.u32 1, %s1189_s22  }
  0x2c   : > { %s926_s8 = smul.u32 152, %s197_s27  ;;  %s1323_s12 = scalar_lea.sflag [#allocation4], %s197_s27 }
  0x2d   : > { %s877_s9 = smul.u32 2432, %s1193_s23  ;;  %p1312_p10 = pnand %p943_p4, %p37_p5 }
  0x2e   : > { %s201_s6 = scalar_lea.vmem [#allocation3], %s926_s8  ;;  %s1130_s16 = scalar_lea.hbm %s1562_s0, 4864 }
  0x2f   : > { %s1319_s28 = scalar_lea.hbm %s1562_s0, %s877_s9  ;;  %s208_s7 = sshll.u32 %s201_s6, 4  ;;  %s1321_s7 = int_to_ptr.vmem [resolvable:$true] %s208_s7 }
  0x30   : > { %s1125_s13 = scalar_lea.hbm %s1319_s28, 2432  ;;  %p1127_p11 = pneg %p1312_p10 }
  0x31   : > { %p1126_p7 = scmp.ne.s32.totalorder %s1319_s28, %s1125_s13  ;;  %p1131_p0 = scmp.lt.u32.totalorder %s1319_s28, %s1562_s0 }
  0x32   : > { %p1132_p2 = scmp.lt.u32.totalorder %s1130_s16, %s1125_s13  ;;  %p1134_p6 = scmp.lt.u32.totalorder %s1125_s13, %s1319_s28 }
  0x33   : > { %p1128_p12 = pnand %p1127_p11, %p1126_p7 }
  0x34   : > { %p1133_p3 = por %p1132_p2, %p1131_p0 }
  0x35   : > { %p1129_p13 = pneg %p1128_p12 }
  0x36   : > { %p1135_p8 = por %p1134_p6, %p1133_p3 }
  0x38   : > { %p1136_p9 = pnand %p1135_p8, %p1129_p13 }
  0x3a   : > { %1139 = shalt.err (!%p1136_p9)
}
  0x3b   : > { %s1140_s19 = scalar_lea.vmem %s1321_s7, 2432  ;;  %s1198_s27 = smov [#allocation3]  }
  0x3c   : > { %p1141_p1 = scmp.ne.s32.totalorder %s1321_s7, %s1140_s19  ;;  %s1145_s8 = sshll.u32 %s1198_s27, 4  ;;  %s1146_s8 = int_to_ptr.vmem [resolvable:$false] %s1145_s8 }
  0x3d   : > { %s1147_s9 = scalar_lea.vmem %s1146_s8, 4864  ;;  %p1148_p7 = scmp.lt.s32.totalorder %s1321_s7, %s1146_s8 }
  0x3e   : > { %p1143_p4 = pnand %p1141_p1, %p1127_p11  ;;  %p1149_p12 = scmp.lt.s32.totalorder %s1147_s9, %s1140_s19 }
  0x40   : > { %p1144_p5 = pneg %p1143_p4  ;;  %p1150_p0 = por %p1149_p12, %p1148_p7 }
  0x42   : > { %p1151_p2 = pnand %p1150_p0, %p1144_p5 }
  0x44   : > { %1154 = shalt.err (!%p1151_p2)
}
  0x45   : > { %s1199_s11 = smov 128   ;;  %s1200_s29 = smov 8  }
  0x46   : > { %941 = dma.hbm_to_vmem [thread:$0]  (!%p1312_p10), %s1319_s28, 2432, %s1321_s7, %s1323_s12, %s1199_s11, %s1199_s11, %s1200_s29  }
  0x47   : > { %p1577_p11 = scmp.ne.s32.totalorder %s1574_s26, 0 }
  0x48   : > { %s222_s6 = sand.u32 (!%p1577_p11), 1, %s1185_s21   ;;  %p1578_p13 = scmp.ne.s32.totalorder (!%p1577_p11), %s1573_s25, 0 }
  0x49   : > { %220 = sbr.rel (%p1577_p11) target bundleno = 563 (0x233), region = 40  ;;  %s223_s14 = scalar_lea.sflag (!%p1577_p11), [#allocation4], %s222_s6 }
  0x4a   : > { %s927_s13 = smul.u32 (!%p1577_p11), 152, %s222_s6 }
  0x4c   : > { %s1354_s15 = scalar_lea.vmem (!%p1577_p11), [#allocation3], %s927_s13 }
  0x50   : > { %1172 = dma.done.wait (%p1578_p13), %s223_s14, 2432  }
  0x51   : > { %1174 = vsyncadd (%p1578_p13), %s223_s14, 4294964864  ;;  %p1579_p3 = scmp.ne.s32.totalorder %s1572_s24, 0 }
  0x53   : > { %1176 = dma.done.wait (%p1579_p3), [#allocation6], 4096  }
  0x54   : > { %1178 = vsyncadd (%p1579_p3), [#allocation6], 4294963200  ;;  %v1201_v1 = vmov 0.0   ;;  %v284_v2 = vld [vmem:[#allocation5 + $0x8] sm:$0xff]  ;;  %v286_v3 = vld [vmem:[#allocation5 + $0x18] sm:$0xff]  ;;  %s258_s28 = smul.u32 19, %s845_s4 }
  0x55   : > { %391 = vmatprep.mubr.f32.mxu0 %v1201_v1  ;;  %451 = vmatprep.mubr.f32.mxu1 %v1201_v1  ;;  %v283_v4 = vld [vmem:[#allocation5] sm:$0xff]  ;;  %v878_v5 = vpack.c.bf16 %v286_v3, %v284_v2  ;;  %v285_v6 = vld [vmem:[#allocation5 + $0x10] sm:$0xff]  ;;  %v288_v7 = vld [vmem:[#allocation5 + $0x28] sm:$0xff]  ;;  %vm748_vm0 = vcmask 7168  }
  0x56   : > { %v290_v8 = vld [vmem:[#allocation5 + $0x38] sm:$0xff]  ;;  %v880_v9 = vpack.c.bf16 %v285_v6, %v283_v4  ;;  %v287_v11 = vld [vmem:[#allocation5 + $0x20] sm:$0xff]  ;;  %v289_v12 = vld [vmem:[#allocation5 + $0x30] sm:$0xff]  ;;  %v317_v6 = vlaneseq  ;;  %p259_p10 = scmp.lt.s32.totalorder %s258_s28, 37 }
  0x57   : > { %v882_v10 = vpack.c.bf16 %v290_v8, %v288_v7  ;;  %v292_v13 = vld [vmem:[#allocation5 + $0x48] sm:$0xff]  ;;  %879 = vmatprep.subr.bf16.mxu0 %v878_v5  ;;  %910 = vmatprep.subr.bf16.mxu1 %v878_v5  ;;  %v294_v14 = vld [vmem:[#allocation5 + $0x58] sm:$0xff]  ;;  %v884_v15 = vpack.c.bf16 %v289_v12, %v287_v11  ;;  %v291_v17 = vld [vmem:[#allocation5 + $0x40] sm:$0xff] }
  0x58   : > { %881 = vmatpush1.bf16.msra.mxu0 %v880_v9  ;;  %918 = vmatpush1.bf16.msra.mxu1 %v880_v9  ;;  %v886_v16 = vpack.c.bf16 %v294_v14, %v292_v13  ;;  %v293_v18 = vld [vmem:[#allocation5 + $0x50] sm:$0xff]  ;;  %v296_v19 = vld [vmem:[#allocation5 + $0x68] sm:$0xff]  ;;  %v298_v20 = vld [vmem:[#allocation5 + $0x78] sm:$0xff]  ;;  %v318_v7 = vshrl.u32 %v317_v6, 7  ;;  %s1586_s28 = smov (!%p259_p10, %s258_s28), 37 }
  0x59   : > { %883 = vmatprep.subr.bf16.mxu0 %v882_v10  ;;  %911 = vmatprep.subr.bf16.mxu1 %v882_v10  ;;  %v888_v21 = vpack.c.bf16 %v293_v18, %v291_v17  ;;  %v890_v22 = vpack.c.bf16 %v298_v20, %v296_v19  ;;  %v295_v23 = vld [vmem:[#allocation5 + $0x60] sm:$0xff]  ;;  %v297_v24 = vld [vmem:[#allocation5 + $0x70] sm:$0xff]  ;;  %v300_v25 = vld [vmem:[#allocation5 + $0x88] sm:$0xff]  ;;  %s853_s7 = sshll.u32 %s1586_s28, 3 }
  0x5a   : > { %v302_v26 = vld [vmem:[#allocation5 + $0x98] sm:$0xff]  ;;  %v892_v27 = vpack.c.bf16 %v297_v24, %v295_v23  ;;  %v299_v29 = vld [vmem:[#allocation5 + $0x80] sm:$0xff]  ;;  %v301_v30 = vld [vmem:[#allocation5 + $0x90] sm:$0xff]  ;;  %v323_v8 = vsub.s32 1, %v318_v7  ;;  %v319_v11 = vsub.s32 0, %v318_v7  ;;  %s1509_s17 = scalar_lea.vmem %s1567_s5, %s853_s7 }
  0x5b   : > { %v894_v28 = vpack.c.bf16 %v302_v26, %v300_v25  ;;  %v304_v31 = vld [vmem:[#allocation5 + $0xa8] sm:$0xff]  ;;  %v306_v32 = vld [vmem:[#allocation5 + $0xb8] sm:$0xff]  ;;  %v896_v33 = vpack.c.bf16 %v301_v30, %v299_v29  ;;  %v303_v35 = vld [vmem:[#allocation5 + $0xa0] sm:$0xff] }
  0x5c   : > { %885 = vmatpush1.bf16.msra.mxu0 %v884_v15  ;;  %919 = vmatpush1.bf16.msra.mxu1 %v884_v15  ;;  %v898_v34 = vpack.c.bf16 %v306_v32, %v304_v31  ;;  %v305_v36 = vld [vmem:[#allocation5 + $0xb0] sm:$0xff]  ;;  %v308_v37 = vld [vmem:[#allocation5 + $0xc8] sm:$0xff]  ;;  %v310_v38 = vld [vmem:[#allocation5 + $0xd8] sm:$0xff] }
  0x5d   : > { %887 = vmatprep.subr.bf16.mxu0 %v886_v16  ;;  %912 = vmatprep.subr.bf16.mxu1 %v886_v16  ;;  %v900_v39 = vpack.c.bf16 %v305_v36, %v303_v35  ;;  %v902_v40 = vpack.c.bf16 %v310_v38, %v308_v37  ;;  %v307_v41 = vld [vmem:[#allocation5 + $0xc0] sm:$0xff]  ;;  %v309_v42 = vld [vmem:[#allocation5 + $0xd0] sm:$0xff]  ;;  %v312_v43 = vld [vmem:[#allocation5 + $0xe8] sm:$0xff] }
  0x5e   : > { %v314_v44 = vld [vmem:[#allocation5 + $0xf8] sm:$0xff]  ;;  %v904_v45 = vpack.c.bf16 %v309_v42, %v307_v41  ;;  %v311_v47 = vld [vmem:[#allocation5 + $0xe0] sm:$0xff]  ;;  %v313_v48 = vld [vmem:[#allocation5 + $0xf0] sm:$0xff] }
  0x5f   : > { %v906_v46 = vpack.c.bf16 %v314_v44, %v312_v43  ;;  %v908_v49 = vpack.c.bf16 %v313_v48, %v311_v47  ;;  %v264_v50 = vld [vmem:[%s1354_s15] sm:$0xff]  ;;  %v274_v51 = vld [vmem:[%s1354_s15 + $0x50] sm:$0xff]  ;;  %v265_v52 = vld [vmem:[%s1354_s15 + $0x8] sm:$0xff] }
  0x60   : > { %889 = vmatpush1.bf16.msra.mxu0 %v888_v21  ;;  %920 = vmatpush1.bf16.msra.mxu1 %v888_v21  ;;  %v275_v53 = vld [vmem:[%s1354_s15 + $0x58] sm:$0xff]  ;;  %v266_v54 = vld [vmem:[%s1354_s15 + $0x10] sm:$0xff]  ;;  %v276_v55 = vld [vmem:[%s1354_s15 + $0x60] sm:$0xff] }
  0x61   : > { %891 = vmatprep.subr.bf16.mxu0 %v890_v22  ;;  %913 = vmatprep.subr.bf16.mxu1 %v890_v22  ;;  %v267_v56 = vld [vmem:[%s1354_s15 + $0x18] sm:$0xff]  ;;  %v277_v57 = vld [vmem:[%s1354_s15 + $0x68] sm:$0xff]  ;;  %v268_v58 = vld [vmem:[%s1354_s15 + $0x20] sm:$0xff] }
  0x62   : > { %v278_v59 = vld [vmem:[%s1354_s15 + $0x70] sm:$0xff]  ;;  %v269_v60 = vld [vmem:[%s1354_s15 + $0x28] sm:$0xff]  ;;  %v279_v61 = vld [vmem:[%s1354_s15 + $0x78] sm:$0xff] }
  0x63   : > { %v270_v62 = vld [vmem:[%s1354_s15 + $0x30] sm:$0xff]  ;;  %v280_v63 = vld [vmem:[%s1354_s15 + $0x80] sm:$0xff]  ;;  %v271_v0 = vld [vmem:[%s1354_s15 + $0x38] sm:$0xff] }
  0x64   : > { %893 = vmatpush1.bf16.msra.mxu0 %v892_v27  ;;  %921 = vmatpush1.bf16.msra.mxu1 %v892_v27  ;;  %v281_v2 = vld [vmem:[%s1354_s15 + $0x88] sm:$0xff]  ;;  %v272_v3 = vld [vmem:[%s1354_s15 + $0x40] sm:$0xff]  ;;  %v282_v4 = vld [vmem:[%s1354_s15 + $0x90] sm:$0xff] }
  0x65   : > { %895 = vmatprep.subr.bf16.mxu0 %v894_v28  ;;  %914 = vmatprep.subr.bf16.mxu1 %v894_v28  ;;  %v273_v5 = vld [vmem:[%s1354_s15 + $0x48] sm:$0xff] }
  0x66   : > { %v315_v9 = vld [vmem:[%s1564_s2] sm:$0x3] }
  0x67   : > { %v1405_v10 = vrot.slane %v315_v9, %v323_v8  ;;  %v1409_v17 = vrot.slane %v315_v9, %v319_v11 }
  0x68   : > { %897 = vmatpush1.bf16.msra.mxu0 %v896_v33  ;;  %922 = vmatpush1.bf16.msra.mxu1 %v896_v33 }
  0x69   : > { %899 = vmatprep.subr.bf16.mxu0 %v898_v34  ;;  %915 = vmatprep.subr.bf16.mxu1 %v898_v34 }
  0x6c   : > { %901 = vmatpush1.bf16.msra.mxu0 %v900_v39  ;;  %923 = vmatpush1.bf16.msra.mxu1 %v900_v39 }
  0x6d   : > { %903 = vmatprep.subr.bf16.mxu0 %v902_v40  ;;  %916 = vmatprep.subr.bf16.mxu1 %v902_v40 }
  0x70   : > { %905 = vmatpush1.bf16.msra.mxu0 %v904_v45  ;;  %924 = vmatpush1.bf16.msra.mxu1 %v904_v45 }
  0x71   : > { %907 = vmatprep.subr.bf16.mxu0 %v906_v46  ;;  %917 = vmatprep.subr.bf16.mxu1 %v906_v46 }
  0x74   : > { %909 = vmatpush1.bf16.msra.mxu0 %v908_v49  ;;  %925 = vmatpush1.bf16.msra.mxu1 %v908_v49 }
  0x77   : > { %392 = vmatmul.mubr.f32.vlgmr.msra.gmra.mrb[0].mxu0 %v264_v50  ;;  %452 = vmatmul.mubr.f32.vlgmr.msra.gmra.mrb[0].mxu1 %v274_v51 }
  0x78   : > { %397 = vmatprep.mubr.f32.mxu0 %v1201_v1  ;;  %457 = vmatprep.mubr.f32.mxu1 %v1201_v1 }
  0x7b   : > { %398 = vmatmul.mubr.f32.gmra.mrb[2].mxu0 %v265_v52  ;;  %458 = vmatmul.mubr.f32.gmra.mrb[2].mxu1 %v275_v53 }
  0x7c   : > { %403 = vmatprep.mubr.f32.mxu0 %v1201_v1  ;;  %463 = vmatprep.mubr.f32.mxu1 %v1201_v1 }
  0x7f   : > { %404 = vmatmul.mubr.f32.gmra.mrb[4].mxu0 %v266_v54  ;;  %464 = vmatmul.mubr.f32.gmra.mrb[4].mxu1 %v276_v55 }
  0x80   : > { %409 = vmatprep.mubr.f32.mxu0 %v1201_v1  ;;  %469 = vmatprep.mubr.f32.mxu1 %v1201_v1 }
  0x83   : > { %410 = vmatmul.mubr.f32.gmra.mrb[6].mxu0 %v267_v56  ;;  %470 = vmatmul.mubr.f32.gmra.mrb[6].mxu1 %v277_v57 }
  0x84   : > { %415 = vmatprep.mubr.f32.mxu0 %v1201_v1  ;;  %475 = vmatprep.mubr.f32.mxu1 %v1201_v1 }
  0x87   : > { %416 = vmatmul.mubr.f32.gmra.mrb[8].mxu0 %v268_v58  ;;  %476 = vmatmul.mubr.f32.gmra.mrb[8].mxu1 %v278_v59 }
  0x88   : > { %421 = vmatprep.mubr.f32.mxu0 %v1201_v1  ;;  %481 = vmatprep.mubr.f32.mxu1 %v1201_v1 }
  0x8b   : > { %422 = vmatmul.mubr.f32.gmra.mrb[10].mxu0 %v269_v60  ;;  %482 = vmatmul.mubr.f32.gmra.mrb[10].mxu1 %v279_v61 }
  0x8c   : > { %427 = vmatprep.mubr.f32.mxu0 %v1201_v1  ;;  %487 = vmatprep.mubr.f32.mxu1 %v1201_v1 }
  0x8f   : > { %428 = vmatmul.mubr.f32.gmra.mrb[12].mxu0 %v270_v62  ;;  %488 = vmatmul.mubr.f32.gmra.mrb[12].mxu1 %v280_v63 }
  0x90   : > { %433 = vmatprep.mubr.f32.mxu0 %v1201_v1  ;;  %493 = vmatprep.mubr.f32.mxu1 %v1201_v1 }
  0x93   : > { %434 = vmatmul.mubr.f32.gmra.mrb[14].mxu0 %v271_v0  ;;  %494 = vmatmul.mubr.f32.gmra.mrb[14].mxu1 %v281_v2 }
  0x94   : > { %439 = vmatprep.mubr.f32.mxu0 %v1201_v1  ;;  %499 = vmatprep.mubr.f32.mxu1 %v1201_v1 }
  0x97   : > { %440 = vmatmul.mubr.f32.gmra.mrb[16].mxu0 %v272_v3  ;;  %500 = vmatmul.mubr.f32.gmra.mrb[16].mxu1 %v282_v4 }
  0x98   : > { %445 = vmatprep.mubr.f32.mxu0 %v1201_v1 }
  0x9b   : > { %446 = vmatmul.mubr.f32.gmra.mrb[18].mxu0 %v273_v5 }
 0x14a   : > { %v393_v12 = vpop.f32.mrb[0].mxu0  ;;  %v453_v13 = vpop.f32.mrb[0].mxu1 }
 0x14b   : > { %v395_v14 = vpop.f32.mrb[1].mxu0  ;;  %v455_v15 = vpop.f32.mrb[1].mxu1  ;;  %v394_v26 = vadd.f32 %v393_v12, %v1409_v17  ;;  %v454_v31 = vadd.f32 %v453_v13, %v1409_v17 }
 0x14c   : > { %v396_v16 = vadd.f32 %v395_v14, %v1405_v10  ;;  %v456_v1 = vadd.f32 %v455_v15, %v1405_v10 }
 0x14e   : > { %v854_v18 = vmul.f32 -1.442695, %v396_v16  ;;  %v864_v19 = vmul.f32 -1.442695, %v456_v1  ;;  %v399_v20 = vpop.f32.mrb[2].mxu0  ;;  %v459_v21 = vpop.f32.mrb[2].mxu1 }
 0x14f   : > { %v401_v22 = vpop.f32.mrb[3].mxu0  ;;  %v461_v23 = vpop.f32.mrb[3].mxu1  ;;  %v400_v36 = vadd.f32 %v399_v20, %v1409_v17  ;;  %v460_v41 = vadd.f32 %v459_v21, %v1409_v17 }
 0x150   : > { %983 = vpow2.f32 %v854_v18  ;;  %v402_v24 = vadd.f32 %v401_v22, %v1405_v10  ;;  %v462_v25 = vadd.f32 %v461_v23, %v1405_v10 }
 0x151   : > { %985 = vpow2.f32 %v864_v19 }
 0x152   : > { %v855_v27 = vmul.f32 -1.442695, %v402_v24  ;;  %v865_v28 = vmul.f32 -1.442695, %v462_v25  ;;  %v405_v29 = vpop.f32.mrb[4].mxu0  ;;  %v465_v30 = vpop.f32.mrb[4].mxu1 }
 0x153   : > { %v407_v32 = vpop.f32.mrb[5].mxu0  ;;  %v467_v33 = vpop.f32.mrb[5].mxu1  ;;  %v406_v56 = vadd.f32 %v405_v29, %v1409_v17  ;;  %v466_v63 = vadd.f32 %v465_v30, %v1409_v17 }
 0x154   : > { %987 = vpow2.f32 %v855_v27  ;;  %v408_v34 = vadd.f32 %v407_v32, %v1405_v10  ;;  %v468_v35 = vadd.f32 %v467_v33, %v1405_v10 }
 0x155   : > { %989 = vpow2.f32 %v865_v28 }
 0x156   : > { %991 = vtanh.f32 %v394_v26  ;;  %v856_v37 = vmul.f32 -1.442695, %v408_v34  ;;  %v866_v38 = vmul.f32 -1.442695, %v468_v35  ;;  %v411_v39 = vpop.f32.mrb[6].mxu0  ;;  %v471_v40 = vpop.f32.mrb[6].mxu1 }
 0x157   : > { %993 = vtanh.f32 %v454_v31  ;;  %v413_v42 = vpop.f32.mrb[7].mxu0  ;;  %v473_v43 = vpop.f32.mrb[7].mxu1  ;;  %v412_v20 = vadd.f32 %v411_v39, %v1409_v17  ;;  %v472_v24 = vadd.f32 %v471_v40, %v1409_v17  ;;  %v1449_v35 = vld [vmem:[%s1565_s3] ss:$0 sm:$0xff] }
 0x158   : > { %995 = vpow2.f32 %v856_v37  ;;  %v414_v44 = vadd.f32 %v413_v42, %v1405_v10  ;;  %v474_v45 = vadd.f32 %v473_v43, %v1405_v10 }
 0x159   : > { %997 = vpow2.f32 %v866_v38 }
 0x15a   : > { %v984_v46 = vpop.eup %983  ;;  %999 = vtanh.f32 %v400_v36  ;;  %v857_v47 = vmul.f32 -1.442695, %v414_v44  ;;  %v1421_v48 = vpop.f32.mrb[8].mxu0  ;;  %v867_v52 = vmul.f32 -1.442695, %v474_v45 }
 0x15b   : > { %v1423_v49 = vpop.f32.mrb[8].mxu1  ;;  %v986_v50 = vpop.eup %985  ;;  %v582_v51 = vadd.f32 1.0, %v984_v46  ;;  %1001 = vtanh.f32 %v460_v41  ;;  %v418_v41 = vadd.f32 %v1421_v48, %v1409_v17 }
 0x15c   : > { %v419_v53 = vpop.f32.mrb[9].mxu0  ;;  %v479_v54 = vpop.f32.mrb[9].mxu1  ;;  %v592_v55 = vadd.f32 1.0, %v986_v50  ;;  %1003 = vpow2.f32 %v857_v47  ;;  %v478_v45 = vadd.f32 %v1423_v49, %v1409_v17 }
 0x15d   : > { %v420_v57 = vadd.f32 %v419_v53, %v1405_v10  ;;  %1005 = vrcp.f32 %v582_v51  ;;  %v480_v0 = vadd.f32 %v479_v54, %v1405_v10 }
 0x15e   : > { %v988_v58 = vpop.eup %987  ;;  %1007 = vrcp.f32 %v592_v55  ;;  %v1427_v59 = vpop.f32.mrb[10].mxu0 }
 0x15f   : > { %v1429_v60 = vpop.f32.mrb[10].mxu1  ;;  %v990_v61 = vpop.eup %989  ;;  %v583_v62 = vadd.f32 1.0, %v988_v58  ;;  %1009 = vpow2.f32 %v867_v52  ;;  %v858_v6 = vmul.f32 -1.442695, %v420_v57  ;;  %v868_v14 = vmul.f32 -1.442695, %v480_v0 }
 0x160   : > { %v425_v2 = vpop.f32.mrb[11].mxu0  ;;  %v485_v3 = vpop.f32.mrb[11].mxu1  ;;  %v593_v5 = vadd.f32 1.0, %v990_v61  ;;  %1011 = vtanh.f32 %v406_v56  ;;  %v424_v49 = vadd.f32 %v1427_v59, %v1409_v17  ;;  %v484_v59 = vadd.f32 %v1429_v60, %v1409_v17 }
 0x161   : > { %v992_v4 = vpop.eup %991  ;;  %1013 = vrcp.f32 %v583_v62  ;;  %v426_v15 = vadd.f32 %v425_v2, %v1405_v10  ;;  %v486_v22 = vadd.f32 %v485_v3, %v1405_v10 }
 0x162   : > { %v994_v7 = vpop.eup %993  ;;  %1015 = vrcp.f32 %v593_v5  ;;  %v1433_v9 = vpop.f32.mrb[12].mxu0 }
 0x163   : > { %v996_v8 = vpop.eup %995  ;;  %v1435_v11 = vpop.f32.mrb[12].mxu1  ;;  %1017 = vtanh.f32 %v466_v63  ;;  %v859_v29 = vmul.f32 -1.442695, %v426_v15  ;;  %v869_v37 = vmul.f32 -1.442695, %v486_v22  ;;  %v430_v22 = vadd.f32 %v1433_v9, %v1409_v17 }
 0x164   : > { %v998_v12 = vpop.eup %997  ;;  %v584_v13 = vadd.f32 1.0, %v996_v8  ;;  %v431_v16 = vpop.f32.mrb[13].mxu0  ;;  %1019 = vpow2.f32 %v858_v6 }
 0x165   : > { %v491_v1 = vpop.f32.mrb[13].mxu1  ;;  %v1000_v18 = vpop.eup %999  ;;  %v594_v19 = vadd.f32 1.0, %v998_v12  ;;  %v432_v33 = vadd.f32 %v431_v16, %v1405_v10 }
 0x166   : > { %v1002_v21 = vpop.eup %1001  ;;  %1021 = vrcp.f32 %v584_v13  ;;  %v1441_v25 = vpop.f32.mrb[14].mxu0  ;;  %v492_v42 = vadd.f32 %v491_v1, %v1405_v10 }
 0x167   : > { %v1004_v23 = vpop.eup %1003  ;;  %1023 = vrcp.f32 %v594_v19  ;;  %v1443_v26 = vpop.f32.mrb[14].mxu1  ;;  %v860_v52 = vmul.f32 -1.442695, %v432_v33 }
 0x168   : > { %v1006_v27 = vpop.eup %1005  ;;  %v585_v28 = vadd.f32 1.0, %v1004_v23  ;;  %1025 = vpow2.f32 %v868_v14  ;;  %v437_v30 = vpop.f32.mrb[15].mxu0  ;;  %v870_v57 = vmul.f32 -1.442695, %v492_v42  ;;  %v436_v42 = vadd.f32 %v1441_v25, %v1409_v17 }
 0x169   : > { %v497_v31 = vpop.f32.mrb[15].mxu1  ;;  %v1008_v32 = vpop.eup %1007  ;;  %1027 = vtanh.f32 %v412_v20  ;;  %v639_v34 = vmul.f32 %v1006_v27, %v992_v4  ;;  %v438_v58 = vadd.f32 %v437_v30, %v1405_v10  ;;  %v490_v30 = vadd.f32 %v1435_v11, %v1409_v17 }
 0x16a   : > { %v1010_v36 = vpop.eup %1009  ;;  %1029 = vrcp.f32 %v585_v28  ;;  %v649_v38 = vmul.f32 %v1008_v32, %v994_v7  ;;  %v1454_v43 = vpop.f32.mrb[16].mxu0  ;;  %v498_v0 = vadd.f32 %v497_v31, %v1405_v10 }
 0x16b   : > { %v1012_v39 = vpop.eup %1011  ;;  %1031 = vtanh.f32 %v472_v24  ;;  %v595_v40 = vadd.f32 1.0, %v1010_v36  ;;  %v1458_v46 = vpop.f32.mrb[16].mxu1  ;;  %v665_v50 = vmul.f32 %v1449_v35, %v639_v34  ;;  %v861_v14 = vmul.f32 -1.442695, %v438_v58 }
 0x16c   : > { %v1014_v44 = vpop.eup %1013  ;;  %1033 = vpow2.f32 %v859_v29  ;;  %v443_v47 = vpop.f32.mrb[17].mxu0  ;;  %v675_v3 = vmul.f32 %v1449_v35, %v649_v38  ;;  %v871_v1 = vmul.f32 -1.442695, %v498_v0  ;;  %v442_v0 = vadd.f32 %v1454_v43, %v1409_v17 }
 0x16d   : > { %v1016_v51 = vpop.eup %1015  ;;  %1035 = vrcp.f32 %v595_v40  ;;  %v503_v53 = vpop.f32.mrb[17].mxu1  ;;  %v640_v54 = vmul.f32 %v1014_v44, %v1000_v18  ;;  %684 = vadd.xlane.f32.xlu0 %v665_v50  ;;  %v444_v20 = vadd.f32 %v443_v47, %v1405_v10 }
 0x16e   : > { %v1018_v48 = vpop.eup %1017  ;;  %1037 = vpow2.f32 %v869_v37  ;;  %v650_v55 = vmul.f32 %v1016_v51, %v1002_v21  ;;  %v1464_v61 = vpop.f32.mrb[18].mxu0  ;;  %v504_v27 = vadd.f32 %v503_v53, %v1405_v10 }
 0x16f   : > { %v1020_v56 = vpop.eup %1019  ;;  %1039 = vtanh.f32 %v418_v41  ;;  %v449_v2 = vpop.f32.mrb[19].mxu0  ;;  %v666_v18 = vmul.f32 %v1449_v35, %v640_v54  ;;  %v862_v34 = vmul.f32 -1.442695, %v444_v20  ;;  %v448_v43 = vadd.f32 %v1464_v61, %v1409_v17 }
 0x170   : > { %v1022_v62 = vpop.eup %1021  ;;  %1041 = vtanh.f32 %v478_v45  ;;  %v586_v63 = vadd.f32 1.0, %v1020_v56  ;;  %v676_v5 = vmul.f32 %v1449_v35, %v650_v55  ;;  %v450_v37 = vadd.f32 %v449_v2, %v1405_v10 }
 0x171   : > { %v1024_v4 = vpop.eup %1023  ;;  %1043 = vpow2.f32 %v860_v52  ;;  %v641_v6 = vmul.f32 %v1022_v62, %v1012_v39  ;;  %704 = vadd.xlane.f32.xlu0 %v675_v3  ;;  %v872_v39 = vmul.f32 -1.442695, %v504_v27  ;;  %v496_v52 = vadd.f32 %v1443_v26, %v1409_v17 }
 0x172   : > { %v1026_v7 = vpop.eup %1025  ;;  %1045 = vrcp.f32 %v586_v63  ;;  %v651_v8 = vmul.f32 %v1024_v4, %v1018_v48  ;;  %706 = vadd.xlane.f32.xlu1 %v676_v5  ;;  %v863_v10 = vmul.f32 -1.442695, %v450_v37 }
 0x173   : > { %v1028_v12 = vpop.eup %1027  ;;  %v596_v13 = vadd.f32 1.0, %v1026_v7  ;;  %1047 = vpow2.f32 %v870_v57  ;;  %v667_v15 = vmul.f32 %v1449_v35, %v641_v6  ;;  %v502_v6 = vadd.f32 %v1458_v46, %v1409_v17 }
 0x174   : > { %v1030_v16 = vpop.eup %1029  ;;  %1049 = vtanh.f32 %v424_v49  ;;  %v677_v31 = vmul.f32 %v1449_v35, %v651_v8 }
 0x175   : > { %v1032_v19 = vpop.eup %1031  ;;  %1051 = vrcp.f32 %v596_v13  ;;  %v642_v21 = vmul.f32 %v1030_v16, %v1028_v12  ;;  %686 = vadd.xlane.f32.xlu0 %v666_v18 }
 0x176   : > { %v1034_v60 = vpop.eup %1033  ;;  %1053 = vtanh.f32 %v484_v59  ;;  %688 = vadd.xlane.f32.xlu1 %v667_v15 }
 0x177   : > { %v1036_v23 = vpop.eup %1035  ;;  %v587_v24 = vadd.f32 1.0, %v1034_v60  ;;  %1055 = vpow2.f32 %v861_v14  ;;  %v668_v28 = vmul.f32 %v1449_v35, %v642_v21 }
 0x178   : > { %v1038_v29 = vpop.eup %1037  ;;  %1057 = vpow2.f32 %v871_v1  ;;  %v652_v32 = vmul.f32 %v1036_v23, %v1032_v19 }
 0x179   : > { %v1040_v33 = vpop.eup %1039  ;;  %1059 = vrcp.f32 %v587_v24  ;;  %v597_v9 = vadd.f32 1.0, %v1038_v29  ;;  %708 = vadd.xlane.f32.xlu0 %v677_v31 }
 0x17a   : > { %v1042_v36 = vpop.eup %1041  ;;  %1061 = vtanh.f32 %v430_v22  ;;  %690 = vadd.xlane.f32.xlu1 %v668_v28  ;;  %v678_v44 = vmul.f32 %v1449_v35, %v652_v32 }
 0x17b   : > { %v1044_v38 = vpop.eup %1043  ;;  %1063 = vrcp.f32 %v597_v9 }
 0x17c   : > { %v1046_v40 = vpop.eup %1045  ;;  %1065 = vtanh.f32 %v490_v30  ;;  %v588_v11 = vadd.f32 1.0, %v1044_v38 }
 0x17d   : > { %v1048_v41 = vpop.eup %1047  ;;  %1067 = vpow2.f32 %v862_v34  ;;  %v643_v45 = vmul.f32 %v1046_v40, %v1040_v33 }
 0x17e   : > { %v1050_v47 = vpop.eup %1049  ;;  %1069 = vrcp.f32 %v588_v11  ;;  %v598_v50 = vadd.f32 1.0, %v1048_v41  ;;  %710 = vadd.xlane.f32.xlu1 %v678_v44 }
 0x17f   : > { %v1052_v51 = vpop.eup %1051  ;;  %1071 = vpow2.f32 %v872_v39  ;;  %v669_v53 = vmul.f32 %v1449_v35, %v643_v45  ;;  %v874_v39 = vld [vmem:[#allocation2] ss:$0 sm:$0xff] }
 0x180   : > { %v1054_v54 = vpop.eup %1053  ;;  %1073 = vrcp.f32 %v598_v50  ;;  %v653_v48 = vmul.f32 %v1052_v51, %v1042_v36 }
 0x181   : > { %v1056_v25 = vpop.eup %1055  ;;  %1075 = vtanh.f32 %v436_v42  ;;  %692 = vadd.xlane.f32.xlu0 %v669_v53 }
 0x182   : > { %v1058_v55 = vpop.eup %1057  ;;  %v589_v56 = vadd.f32 1.0, %v1056_v25  ;;  %1077 = vpow2.f32 %v863_v10  ;;  %v679_v58 = vmul.f32 %v1449_v35, %v653_v48 }
 0x183   : > { %v1060_v49 = vpop.eup %1059  ;;  %1079 = vtanh.f32 %v496_v52  ;;  %v599_v57 = vadd.f32 1.0, %v1058_v55 }
 0x184   : > { %v1062_v62 = vpop.eup %1061  ;;  %1081 = vrcp.f32 %v589_v56  ;;  %v644_v26 = vmul.f32 %v1060_v49, %v1050_v47 }
 0x185   : > { %v1064_v63 = vpop.eup %1063  ;;  %1083 = vrcp.f32 %v599_v57  ;;  %712 = vadd.xlane.f32.xlu0 %v679_v58 }
 0x186   : > { %v1066_v2 = vpop.eup %1065  ;;  %v670_v3 = vmul.f32 %v1449_v35, %v644_v26  ;;  %v654_v4 = vmul.f32 %v1064_v63, %v1054_v54  ;;  %1085 = vtanh.f32 %v442_v0 }
 0x187   : > { %v1068_v5 = vpop.eup %1067 }
 0x188   : > { %v1070_v7 = vpop.eup %1069  ;;  %v590_v59 = vadd.f32 1.0, %v1068_v5  ;;  %694 = vadd.xlane.f32.xlu1 %v670_v3  ;;  %v680_v15 = vmul.f32 %v1449_v35, %v654_v4 }
 0x189   : > { %v1072_v8 = vpop.eup %1071  ;;  %v645_v12 = vmul.f32 %v1070_v7, %v1062_v62 }
 0x18a   : > { %v1074_v13 = vpop.eup %1073  ;;  %1087 = vrcp.f32 %v590_v59  ;;  %v600_v14 = vadd.f32 1.0, %v1072_v8 }
 0x18b   : > { %v1076_v16 = vpop.eup %1075  ;;  %1089 = vtanh.f32 %v502_v6  ;;  %v671_v1 = vmul.f32 %v1449_v35, %v645_v12  ;;  %v655_v18 = vmul.f32 %v1074_v13, %v1066_v2 }
 0x18c   : > { %v1078_v46 = vpop.eup %1077  ;;  %1091 = vrcp.f32 %v600_v14  ;;  %714 = vadd.xlane.f32.xlu1 %v680_v15 }
 0x18d   : > { %v1080_v19 = vpop.eup %1079  ;;  %v591_v20 = vadd.f32 1.0, %v1078_v46  ;;  %696 = vadd.xlane.f32.xlu0 %v671_v1  ;;  %1093 = vtanh.f32 %v448_v43  ;;  %v681_v17 = vmul.f32 %v1449_v35, %v655_v18 }
 0x18e   : > { %v1082_v21 = vpop.eup %1081 }
 0x18f   : > { %v1084_v60 = vpop.eup %1083  ;;  %1095 = vrcp.f32 %v591_v20  ;;  %v646_v22 = vmul.f32 %v1082_v21, %v1076_v16 }
 0x190   : > { %v656_v61 = vmul.f32 %v1084_v60, %v1080_v19  ;;  %v1086_v24 = vpop.eup %1085 }
 0x191   : > { %v672_v23 = vmul.f32 %v1449_v35, %v646_v22  ;;  %716 = vadd.xlane.f32.xlu0 %v681_v17 }
 0x192   : > { %v682_v38 = vmul.f32 %v1449_v35, %v656_v61 }
 0x193   : > { %698 = vadd.xlane.f32.xlu1 %v672_v23 }
 0x194   : > { %v1088_v27 = vpop.eup %1087 }
 0x195   : > { %v1090_v28 = vpop.eup %1089  ;;  %v647_v29 = vmul.f32 %v1088_v27, %v1086_v24 }
 0x196   : > { %v1092_v30 = vpop.eup %1091 }
 0x197   : > { %v673_v31 = vmul.f32 %v1449_v35, %v647_v29  ;;  %v657_v32 = vmul.f32 %v1092_v30, %v1090_v28  ;;  %v1094_v33 = vpop.eup %1093 }
 0x199   : > { %v1096_v9 = vpop.eup %1095  ;;  %700 = vadd.xlane.f32.xlu0 %v673_v31  ;;  %v683_v36 = vmul.f32 %v1449_v35, %v657_v32 }
 0x19a   : > { %v648_v34 = vmul.f32 %v1096_v9, %v1094_v33 }
 0x19c   : > { %v674_v37 = vmul.f32 %v1449_v35, %v648_v34 }
 0x19d   : > { %720 = vadd.xlane.f32.xlu0 %v683_v36 }
 0x19e   : > { %702 = vadd.xlane.f32.xlu1 %v674_v37 }
 0x1a2   : > { %718 = vadd.xlane.f32.xlu1 %v682_v38 }
 0x1fa   : > { %v685_v40 = vpop.xlane.xlu0 %684 }
 0x1fb   : > { %v729_v35 = vadd.f32 %v874_v39, %v685_v40 }
 0x1fd   : > { %749 = vst.msk [vmem:[%s1509_s17] sm:$0xff] %vm748_vm0, %v729_v35 }
 0x1fe   : > { %v705_v11 = vpop.xlane.xlu0 %704 }
 0x1ff   : > { %v707_v41 = vpop.xlane.xlu1 %706  ;;  %v739_v42 = vadd.f32 %v874_v39, %v705_v11 }
 0x200   : > { %v740_v44 = vadd.f32 %v874_v39, %v707_v41 }
 0x201   : > { %759 = vst.msk [vmem:[%s1509_s17 + $0x50] sm:$0xff] %vm748_vm0, %v739_v42 }
 0x202   : > { %760 = vst.msk [vmem:[%s1509_s17 + $0x58] sm:$0xff] %vm748_vm0, %v740_v44  ;;  %v687_v45 = vpop.xlane.xlu0 %686 }
 0x203   : > { %v689_v47 = vpop.xlane.xlu1 %688  ;;  %v730_v50 = vadd.f32 %v874_v39, %v687_v45 }
 0x204   : > { %v731_v10 = vadd.f32 %v874_v39, %v689_v47 }
 0x205   : > { %750 = vst.msk [vmem:[%s1509_s17 + $0x8] sm:$0xff] %vm748_vm0, %v730_v50 }
 0x206   : > { %751 = vst.msk [vmem:[%s1509_s17 + $0x10] sm:$0xff] %vm748_vm0, %v731_v10  ;;  %v709_v51 = vpop.xlane.xlu0 %708 }
 0x207   : > { %v691_v52 = vpop.xlane.xlu1 %690  ;;  %v741_v53 = vadd.f32 %v874_v39, %v709_v51 }
 0x208   : > { %v732_v54 = vadd.f32 %v874_v39, %v691_v52 }
 0x209   : > { %761 = vst.msk [vmem:[%s1509_s17 + $0x60] sm:$0xff] %vm748_vm0, %v741_v53 }
 0x20a   : > { %752 = vst.msk [vmem:[%s1509_s17 + $0x18] sm:$0xff] %vm748_vm0, %v732_v54 }
 0x20b   : > { %v711_v48 = vpop.xlane.xlu1 %710 }
 0x20c   : > { %v742_v25 = vadd.f32 %v874_v39, %v711_v48 }
 0x20e   : > { %v693_v55 = vpop.xlane.xlu0 %692  ;;  %762 = vst.msk [vmem:[%s1509_s17 + $0x68] sm:$0xff] %vm748_vm0, %v742_v25 }
 0x20f   : > { %v733_v56 = vadd.f32 %v874_v39, %v693_v55 }
 0x211   : > { %753 = vst.msk [vmem:[%s1509_s17 + $0x20] sm:$0xff] %vm748_vm0, %v733_v56 }
 0x212   : > { %v713_v49 = vpop.xlane.xlu0 %712 }
 0x213   : > { %v743_v57 = vadd.f32 %v874_v39, %v713_v49 }
 0x215   : > { %v695_v58 = vpop.xlane.xlu1 %694  ;;  %763 = vst.msk [vmem:[%s1509_s17 + $0x70] sm:$0xff] %vm748_vm0, %v743_v57 }
 0x216   : > { %v734_v62 = vadd.f32 %v874_v39, %v695_v58 }
 0x218   : > { %754 = vst.msk [vmem:[%s1509_s17 + $0x28] sm:$0xff] %vm748_vm0, %v734_v62 }
 0x219   : > { %v715_v26 = vpop.xlane.xlu1 %714 }
 0x21a   : > { %v744_v63 = vadd.f32 %v874_v39, %v715_v26  ;;  %v697_v0 = vpop.xlane.xlu0 %696 }
 0x21b   : > { %v735_v2 = vadd.f32 %v874_v39, %v697_v0 }
 0x21c   : > { %764 = vst.msk [vmem:[%s1509_s17 + $0x78] sm:$0xff] %vm748_vm0, %v744_v63 }
 0x21d   : > { %755 = vst.msk [vmem:[%s1509_s17 + $0x30] sm:$0xff] %vm748_vm0, %v735_v2 }
 0x21e   : > { %v717_v3 = vpop.xlane.xlu0 %716 }
 0x21f   : > { %v745_v4 = vadd.f32 %v874_v39, %v717_v3 }
 0x220   : > { %v699_v5 = vpop.xlane.xlu1 %698 }
 0x221   : > { %v736_v6 = vadd.f32 %v874_v39, %v699_v5  ;;  %765 = vst.msk [vmem:[%s1509_s17 + $0x80] sm:$0xff] %vm748_vm0, %v745_v4 }
 0x223   : > { %756 = vst.msk [vmem:[%s1509_s17 + $0x38] sm:$0xff] %vm748_vm0, %v736_v6 }
 0x226   : > { %v701_v7 = vpop.xlane.xlu0 %700 }
 0x227   : > { %v737_v59 = vadd.f32 %v874_v39, %v701_v7 }
 0x229   : > { %757 = vst.msk [vmem:[%s1509_s17 + $0x40] sm:$0xff] %vm748_vm0, %v737_v59 }
 0x22a   : > { %v721_v8 = vpop.xlane.xlu0 %720 }
 0x22b   : > { %v703_v12 = vpop.xlane.xlu1 %702  ;;  %v747_v13 = vadd.f32 %v874_v39, %v721_v8 }
 0x22c   : > { %v738_v14 = vadd.f32 %v874_v39, %v703_v12 }
 0x22d   : > { %767 = vst.msk [vmem:[%s1509_s17 + $0x90] sm:$0xff] %vm748_vm0, %v747_v13 }
 0x22e   : > { %758 = vst.msk [vmem:[%s1509_s17 + $0x48] sm:$0xff] %vm748_vm0, %v738_v14 }
 0x22f   : > { %v719_v43 = vpop.xlane.xlu1 %718 }
 0x230   : > { %v746_v15 = vadd.f32 %v874_v39, %v719_v43 }
 0x232   : > { %766 = vst.msk [vmem:[%s1509_s17 + $0x88] sm:$0xff] %vm748_vm0, %v746_v15 }
 0x233 PF: > { %s1580_s23 = smov %s1308_s20  ;;  %p18_p6 = scmp.ge.s32.totalorder %s1282_s30, 4  }
 0x234   : > { %s1581_s20 = smov %s1185_s21  ;;  %s1582_s21 = smov %s1189_s22 }
 0x235   : > { %s1583_s22 = smov %s1580_s23  ;;  %s1584_s23 = smov %s1282_s30 }
 0x236   :  { %20 = sbr.rel (!%p18_p6) target bundleno = 7 (0x7), region = 84 }
 0x23d   :  { %790 = vsyncpa [#allocation4], 1 }
 0x23e   :  { %792 = vsyncpa [#allocation4 + $0x1], 1 }
 0x23f   :  { %793 = vsyncpa [#allocation6], 1 }

</bundles_post_ra>
